<compile_context>
chip_gen: v5e
topology: v5e:2x2
jax: 0.10.0
libtpu: 0.0.40
codegen_flags: <defaults>
</compile_context>

<pallas_src>
import jax
import jax.numpy as jnp
from jax.experimental import pallas as pl
from jax.experimental.pallas import tpu as pltpu


def cond_embed_kernel(t_ref, table_ref, w1_ref, b1_ref, w2_ref, b2_ref, out_ref):
    # t_ref:     (bb, 1)  int32 labels
    # table_ref: (V, d_model) embedding table (row 0 is the zero padding row)
    # w1/b1:     (d_model, dim) / (1, dim)
    # w2/b2:     (dim, dim)     / (1, dim)
    # out_ref:   (bb, dim)
    labels = t_ref[...]                                            # (bb, 1) int32
    bb = labels.shape[0]
    V = table_ref.shape[0]

    # One-hot gather on the VPU + one MXU op (no per-row scalar loop, no masked stores).
    lane_ids = jax.lax.broadcasted_iota(jnp.int32, (bb, V), 1)     # (bb, V)
    one_hot = (labels == lane_ids).astype(jnp.float32)             # zero row if label OOB
    emb = jnp.dot(one_hot, table_ref[...], preferred_element_type=jnp.float32)

    # Linear -> Swish -> Linear, all in vregs / VMEM.
    h = jnp.dot(emb, w1_ref[...], preferred_element_type=jnp.float32) + b1_ref[...]
    h = h * jax.nn.sigmoid(h)                                      # Swish (sigmoid -> EUP)
    out = jnp.dot(h, w2_ref[...], preferred_element_type=jnp.float32) + b2_ref[...]
    out_ref[...] = out.astype(out_ref.dtype)


def _pick_block_b(B):
    # Largest tile that evenly divides B (keeps (8,128) tiling legal); tiny/odd B -> one block.
    for cand in (512, 256, 128, 64, 32, 16, 8):
        if B % cand == 0:
            return cand
    return B


def conditional_embedding(t, table, w1, b1, w2, b2):
    """Forward of ConditionalEmbedding: (B,) int labels -> (B, dim) float32."""
    B = t.shape[0]
    V, d_model = table.shape
    dim = w2.shape[1]
    bb = _pick_block_b(B)
    grid = (B // bb,) if B % bb == 0 else (1,)

    t2d = t.astype(jnp.int32).reshape(B, 1)
    b1_2d = b1.reshape(1, dim).astype(jnp.float32)
    b2_2d = b2.reshape(1, dim).astype(jnp.float32)

    return pl.pallas_call(
        cond_embed_kernel,
        out_shape=jax.ShapeDtypeStruct((B, dim), jnp.float32),
        grid=grid,
        in_specs=[
            pl.BlockSpec((bb, 1), lambda i: (i, 0)),               # labels: tiled over B
            pl.BlockSpec((V, d_model), lambda i: (0, 0)),          # table: resident across grid
            pl.BlockSpec((d_model, dim), lambda i: (0, 0)),
            pl.BlockSpec((1, dim), lambda i: (0, 0)),
            pl.BlockSpec((dim, dim), lambda i: (0, 0)),
            pl.BlockSpec((1, dim), lambda i: (0, 0)),
        ],
        out_specs=pl.BlockSpec((bb, dim), lambda i: (i, 0)),        # one dense store per tile
        compiler_params=pltpu.CompilerParams(
            dimension_semantics=("parallel",),                      # megacore sharding on v7x
        ),
    )(t2d, table.astype(jnp.float32), w1.astype(jnp.float32), b1_2d,
      w2.astype(jnp.float32), b2_2d)


def reference(t, table, w1, b1, w2, b2):
    emb = table[t]                               # gather; row 0 is zeros (padding_idx=0)
    h = emb @ w1 + b1
    h = h * jax.nn.sigmoid(h)
    return h @ w2 + b2


if __name__ == "__main__":
    num_labels = 10      # vocab = num_labels + 1 = 11, index 0 is the padding label
    d_model = 32
    dim = 64
    B = 8

    key = jax.random.PRNGKey(0)
    k_tab, k_w1, k_b1, k_w2, k_b2, k_t = jax.random.split(key, 6)

    # Embedding: N(0, 1) like nn.Embedding default, padding row (index 0) zeroed.
    table = jax.random.normal(k_tab, (num_labels + 1, d_model), dtype=jnp.float32)
    table = table.at[0].set(0.0)

    # Linear layers: uniform(-1/sqrt(fan_in), 1/sqrt(fan_in)), stored as (in, out).
    lim1 = 1.0 / jnp.sqrt(d_model)
    w1 = jax.random.uniform(k_w1, (d_model, dim), jnp.float32, -lim1, lim1)
    b1 = jax.random.uniform(k_b1, (dim,), jnp.float32, -lim1, lim1)
    lim2 = 1.0 / jnp.sqrt(dim)
    w2 = jax.random.uniform(k_w2, (dim, dim), jnp.float32, -lim2, lim2)
    b2 = jax.random.uniform(k_b2, (dim,), jnp.float32, -lim2, lim2)

    # Labels in [0, num_labels]; includes the padding index 0 path.
    t = jax.random.randint(k_t, (B,), 0, num_labels + 1, dtype=jnp.int32)

    out = conditional_embedding(t, table, w1, b1, w2, b2)
    out = jax.block_until_ready(out)

    ref = reference(t, table, w1, b1, w2, b2)
    assert out.shape == (B, dim)
    assert jnp.allclose(out, ref, atol=1e-5, rtol=1e-5), "mismatch vs reference"

    print("KERNEL_OK")
</pallas_src>

<mosaic_0001>
module attributes {stable_mosaic.version = 11 : i64} {
  func.func @cond_embed_kernel(%arg0: i32, %arg1: memref<8x1xi32, #tpu.memory_space<vmem>>, %arg2: memref<11x32xf32, #tpu.memory_space<vmem>>, %arg3: memref<32x64xf32, #tpu.memory_space<vmem>>, %arg4: memref<1x64xf32, #tpu.memory_space<vmem>>, %arg5: memref<64x64xf32, #tpu.memory_space<vmem>>, %arg6: memref<1x64xf32, #tpu.memory_space<vmem>>, %arg7: memref<8x64xf32, #tpu.memory_space<vmem>>) attributes {dimension_semantics = [#tpu.dimension_semantics<parallel>], iteration_bounds = array<i64: 1>, scalar_prefetch = 0 : i64, scratch_operands = 0 : i64, tpu.core_type = #tpu.core_type<tc>, window_params = [{transform_indices = @transform_0, window_bounds = array<i64: 8, 1>}, {pipeline_mode = #tpu.pipeline_mode<synchronous>, transform_indices = @transform_1, window_bounds = array<i64: 11, 32>}, {pipeline_mode = #tpu.pipeline_mode<synchronous>, transform_indices = @transform_2, window_bounds = array<i64: 32, 64>}, {pipeline_mode = #tpu.pipeline_mode<synchronous>, transform_indices = @transform_3, window_bounds = array<i64: 1, 64>}, {pipeline_mode = #tpu.pipeline_mode<synchronous>, transform_indices = @transform_4, window_bounds = array<i64: 64, 64>}, {pipeline_mode = #tpu.pipeline_mode<synchronous>, transform_indices = @transform_5, window_bounds = array<i64: 1, 64>}, {transform_indices = @transform_6, window_bounds = array<i64: 8, 64>}]} {
    %c0 = arith.constant 0 : index
    %c0_0 = arith.constant 0 : index
    %0 = vector.load %arg1[%c0, %c0_0] : memref<8x1xi32, #tpu.memory_space<vmem>>, vector<8x1xi32>
    %1 = tpu.iota {dimensions = array<i32: 1>} : vector<8x11xi32>
    %2 = vector.broadcast %0 : vector<8x1xi32> to vector<8x11xi32>
    %3 = arith.cmpi eq, %2, %1 : vector<8x11xi32>
    %4 = arith.extui %3 : vector<8x11xi1> to vector<8x11xi32>
    %5 = arith.sitofp %4 : vector<8x11xi32> to vector<8x11xf32>
    %c0_1 = arith.constant 0 : index
    %c0_2 = arith.constant 0 : index
    %6 = vector.load %arg2[%c0_1, %c0_2] : memref<11x32xf32, #tpu.memory_space<vmem>>, vector<11x32xf32>
    %cst = arith.constant dense<0.000000e+00> : vector<8x32xf32>
    %7 = tpu.matmul %5, %6, %cst {dimension_numbers = #tpu.dot_dimension_numbers<[1], [0], [0], [1], [0, 0, 1, 1], [], []>} : vector<8x11xf32>, vector<11x32xf32>, vector<8x32xf32> -> vector<8x32xf32>
    %c0_3 = arith.constant 0 : index
    %c0_4 = arith.constant 0 : index
    %8 = vector.load %arg3[%c0_3, %c0_4] : memref<32x64xf32, #tpu.memory_space<vmem>>, vector<32x64xf32>
    %cst_5 = arith.constant dense<0.000000e+00> : vector<8x64xf32>
    %9 = tpu.matmul %7, %8, %cst_5 {dimension_numbers = #tpu.dot_dimension_numbers<[1], [0], [0], [1], [0, 0, 1, 1], [], []>} : vector<8x32xf32>, vector<32x64xf32>, vector<8x64xf32> -> vector<8x64xf32>
    %c0_6 = arith.constant 0 : index
    %c0_7 = arith.constant 0 : index
    %10 = vector.load %arg4[%c0_6, %c0_7] : memref<1x64xf32, #tpu.memory_space<vmem>>, vector<1x64xf32>
    %11 = vector.broadcast %10 : vector<1x64xf32> to vector<8x64xf32>
    %12 = arith.addf %9, %11 : vector<8x64xf32>
    %13 = arith.negf %12 : vector<8x64xf32>
    %14 = math.exp %13 : vector<8x64xf32>
    %cst_8 = arith.constant 1.000000e+00 : f32
    %15 = vector.broadcast %cst_8 : f32 to vector<8x64xf32>
    %16 = arith.addf %15, %14 : vector<8x64xf32>
    %17 = arith.divf %15, %16 : vector<8x64xf32>
    %18 = arith.mulf %12, %17 : vector<8x64xf32>
    %c0_9 = arith.constant 0 : index
    %c0_10 = arith.constant 0 : index
    %19 = vector.load %arg5[%c0_9, %c0_10] : memref<64x64xf32, #tpu.memory_space<vmem>>, vector<64x64xf32>
    %cst_11 = arith.constant dense<0.000000e+00> : vector<8x64xf32>
    %20 = tpu.matmul %18, %19, %cst_11 {dimension_numbers = #tpu.dot_dimension_numbers<[1], [0], [0], [1], [0, 0, 1, 1], [], []>} : vector<8x64xf32>, vector<64x64xf32>, vector<8x64xf32> -> vector<8x64xf32>
    %c0_12 = arith.constant 0 : index
    %c0_13 = arith.constant 0 : index
    %21 = vector.load %arg6[%c0_12, %c0_13] : memref<1x64xf32, #tpu.memory_space<vmem>>, vector<1x64xf32>
    %22 = vector.broadcast %21 : vector<1x64xf32> to vector<8x64xf32>
    %23 = arith.addf %20, %22 : vector<8x64xf32>
    %c0_14 = arith.constant 0 : index
    %c0_15 = arith.constant 0 : index
    %24 = vector.load %arg7[%c0_14, %c0_15] : memref<8x64xf32, #tpu.memory_space<vmem>>, vector<8x64xf32>
    tpu.vector_store %arg7[%c0_14, %c0_15], %23 {strides = array<i32>} : memref<8x64xf32, #tpu.memory_space<vmem>>, vector<8x64xf32>,
    return
  }
  func.func @transform_0(%arg0: i32) -> (i32, i32) {
    %c0_i32 = arith.constant 0 : i32
    %c0_i32_0 = arith.constant 0 : i32
    return %arg0, %c0_i32 : i32, i32
  }
  func.func @transform_1(%arg0: i32) -> (i32, i32) {
    %c0_i32 = arith.constant 0 : i32
    %c0_i32_0 = arith.constant 0 : i32
    %c0_i32_1 = arith.constant 0 : i32
    return %c0_i32, %c0_i32_0 : i32, i32
  }
  func.func @transform_2(%arg0: i32) -> (i32, i32) {
    %c0_i32 = arith.constant 0 : i32
    %c0_i32_0 = arith.constant 0 : i32
    %c0_i32_1 = arith.constant 0 : i32
    return %c0_i32, %c0_i32_0 : i32, i32
  }
  func.func @transform_3(%arg0: i32) -> (i32, i32) {
    %c0_i32 = arith.constant 0 : i32
    %c0_i32_0 = arith.constant 0 : i32
    %c0_i32_1 = arith.constant 0 : i32
    return %c0_i32, %c0_i32_0 : i32, i32
  }
  func.func @transform_4(%arg0: i32) -> (i32, i32) {
    %c0_i32 = arith.constant 0 : i32
    %c0_i32_0 = arith.constant 0 : i32
    %c0_i32_1 = arith.constant 0 : i32
    return %c0_i32, %c0_i32_0 : i32, i32
  }
  func.func @transform_5(%arg0: i32) -> (i32, i32) {
    %c0_i32 = arith.constant 0 : i32
    %c0_i32_0 = arith.constant 0 : i32
    %c0_i32_1 = arith.constant 0 : i32
    return %c0_i32, %c0_i32_0 : i32, i32
  }
  func.func @transform_6(%arg0: i32) -> (i32, i32) {
    %c0_i32 = arith.constant 0 : i32
    %c0_i32_0 = arith.constant 0 : i32
    return %arg0, %c0_i32 : i32, i32
  }
}

</mosaic_0001>

<bundles_post_ra>
// kernel: tpu_custom_call.1
= control target key start
LH: loop header
LB: loop body
LE: loop exit
PB: predicated region body
PF: predicated region fallthrough
CT: control target
= control target key end

     0   :  { %11 = vsyncpa [#allocation3], 0  ;;  %s404_s0 = inlined_call_operand.vmem [shape: s32[8,1], index: 0, kind: input, shape index: {}]   ;;  %s405_s1 = inlined_call_operand.hbm [shape: f32[11,32], index: 1, kind: input, shape index: {}]   ;;  %s406_s2 = inlined_call_operand.hbm [shape: f32[32,64], index: 2, kind: input, shape index: {}]   ;;  %s407_s3 = inlined_call_operand.vmem [shape: f32[1,64], index: 3, kind: input, shape index: {}]   ;;  %s408_s4 = inlined_call_operand.hbm [shape: f32[64,64], index: 4, kind: input, shape index: {}]   ;;  %s409_s5 = inlined_call_operand.vmem [shape: f32[1,64], index: 5, kind: input, shape index: {}]   ;;  %s410_s6 = inlined_call_operand.hbm [shape: f32[8,64], index: 6, kind: output, shape index: {}]  }
   0x1   :  { %12 = vsyncpa [#allocation6], 0 }
   0x2   :  { %13 = vsyncpa [#allocation4], 0  ;;  %s33_s23 = sshll.u32 %s406_s2, 4  ;;  %s340_s24 = smov [#allocation5]   ;;  %s34_s23 = int_to_ptr.hbm [resolvable:$true] %s33_s23 }
   0x3   :  { %s35_s25 = sshll.u32 %s340_s24, 4  ;;  %s20_s28 = sshll.u32 %s405_s1, 4  ;;  %s36_s25 = int_to_ptr.vmem [resolvable:$true] %s35_s25  ;;  %s21_s28 = int_to_ptr.hbm [resolvable:$true] %s20_s28 }
   0x4   :  { %s341_s29 = smov 128   ;;  %s342_s30 = smov 8  }
   0x5   :  { %41 = dma.hbm_to_vmem [thread:$0]  %s34_s23, 512, %s36_s25, [#allocation6], %s341_s29, %s341_s29, %s342_s30  }
   0x6   :  { %s343_s7 = smov [#allocation2]   ;;  %s48_s11 = sshll.u32 %s408_s4, 4  ;;  %s49_s11 = int_to_ptr.hbm [resolvable:$true] %s48_s11 }
   0x7   :  { %s22_s8 = sshll.u32 %s343_s7, 4  ;;  %s344_s2 = smov [#allocation7]   ;;  %s23_s8 = int_to_ptr.vmem [resolvable:$true] %s22_s8 }
   0x8   :  { %28 = dma.hbm_to_vmem [thread:$0]  %s21_s28, 256, %s23_s8, [#allocation3], %s341_s29, %s341_s29, %s342_s30  }
   0x9   :  { %s50_s12 = sshll.u32 %s344_s2, 4  ;;  %s51_s12 = int_to_ptr.vmem [resolvable:$true] %s50_s12 }
   0xa   :  { %56 = dma.hbm_to_vmem [thread:$0]  %s49_s11, 1024, %s51_s12, [#allocation6], %s341_s29, %s341_s29, %s342_s30  }
   0xb   :  { %334 = dma.done.wait [#allocation3], 256  }
   0xc   :  { %335 = vsyncadd [#allocation3], 4294967040 }
   0xd   :  { %336 = dma.done.wait [#allocation6], 1536  }
   0xe   :  { %337 = vsyncadd [#allocation6], 4294965760  ;;  %v345_v0 = vmov 0   ;;  %vm86_vm0 = vcmask 1042432   ;;  %v71_v1 = vld [vmem:[%s404_s0] sm:$0xff]  ;;  %v113_v4 = vld [vmem:[#allocation5 + $0x18] sm:$0xff]  ;;  %v72_v7 = vlaneseq }
   0xf   :  { %231 = vset.pattern.permute.xlu0 %v345_v0  ;;  %v81_v2 = vld [vmem:[#allocation2 + $0x8] sm:$0x7]  ;;  %v80_v3 = vld [vmem:[#allocation2] sm:$0xff]  ;;  %134 = vmatpush.msra.mxu1 %v113_v4  ;;  %v111_v6 = vld [vmem:[#allocation5 + $0x8] sm:$0xff]  ;;  %vm82_vm1 = vcmask 89088   ;;  %v346_v10 = vmov 0.0  }
  0x10   :  { %75 = vperm.xlu0 %231, %v71_v1   ;;  %218 = vmatpush.msk.msra.mxu0 %vm86_vm0, %v81_v2  ;;  %v112_v5 = vld [vmem:[#allocation5 + $0x10] sm:$0xff]  ;;  %v73_v8 = vand.u32 127, %v72_v7  ;;  %v110_v12 = vld [vmem:[#allocation5] sm:$0xff]  ;;  %vm118_vm3 = vcmask 261120   ;;  %v169_v14 = vld [vmem:[#allocation7 + $0x38] sm:$0xff]  ;;  %vm174_vm8 = vcmask 523264  }
  0x11   :  { %135 = vmatpush.msra.mxu1 %v112_v5  ;;  %186 = vmatpush.msra.mxu2 %v169_v14  ;;  %v168_v15 = vld [vmem:[#allocation7 + $0x30] sm:$0xff]  ;;  %v167_v16 = vld [vmem:[#allocation7 + $0x28] sm:$0xff]  ;;  %v166_v17 = vld [vmem:[#allocation7 + $0x20] sm:$0xff]  ;;  %s347_s15 = smov [#allocation8]   ;;  %s206_s19 = sshll.u32 %s410_s6, 4  ;;  %s207_s19 = int_to_ptr.hbm [resolvable:$true] %s206_s19 }
  0x12   :  { %105 = vmatpush.msra.mxu0 %v80_v3  ;;  %v165_v18 = vld [vmem:[#allocation7 + $0x18] sm:$0xff]  ;;  %v164_v19 = vld [vmem:[#allocation7 + $0x10] sm:$0xff]  ;;  %v163_v21 = vld [vmem:[#allocation7 + $0x8] sm:$0xff]  ;;  %s204_s16 = sshll.u32 %s347_s15, 4  ;;  %s205_s16 = int_to_ptr.vmem [resolvable:$true] %s204_s16 }
  0x13   :  { %136 = vmatpush.msra.mxu1 %v111_v6  ;;  %187 = vmatpush.msra.mxu2 %v168_v15  ;;  %v232_v20 = vld [vmem:[%s407_s3] ss:$0 sm:$0xff]  ;;  %v162_v22 = vld [vmem:[#allocation7] sm:$0xff] }
  0x14   :  { %v233_v39 = vld [vmem:[%s409_s5] ss:$0 sm:$0xff] }
  0x15   :  { %137 = vmatpush.msra.mxu1 %v110_v12  ;;  %188 = vmatpush.msra.mxu2 %v167_v16 }
  0x17   :  { %189 = vmatpush.msra.mxu2 %v166_v17 }
  0x19   :  { %190 = vmatpush.msra.mxu2 %v165_v18 }
  0x1b   :  { %191 = vmatpush.msra.mxu2 %v164_v19 }
  0x1d   :  { %192 = vmatpush.msra.mxu2 %v163_v21 }
  0x1f   :  { %193 = vmatpush.msra.mxu2 %v162_v22 }
  0x82   :  { %v76_v9 = vpop.permute.xlu0 %75 }
  0x83   :  { %vm77_vm2 = vcmp.eq.s32.totalorder %v76_v9, %v73_v8 }
  0x84   :  { %v217_v11 = vsel %vm77_vm2, 1.0, %v346_v10 }
  0x85   :  { %219 = vmatmul.msk.f32.vlgmr.msra.gmra.mxu0 %vm82_vm1, %v217_v11 }
 0x102   :  { %v107_v13 = vpop.f32.mrf.mxu0 }
 0x103   :  { %220 = vmatmul.msk.f32.vlgmr.msra.gmra.mxu1 %vm118_vm3, %v107_v13 }
 0x180   :  { %v139_v23 = vpop.f32.mrf.mxu1 }
 0x181   :  { %v140_v24 = vadd.f32 %v232_v20, %v139_v23 }
 0x183   :  { %v221_v25 = vmul.f32 -1.442695, %v140_v24 }
 0x185   :  { %234 = vpow2.f32 %v221_v25 }
 0x18b   :  { %v235_v26 = vpop.eup %234 }
 0x18c   :  { %v145_v27 = vadd.f32 1.0, %v235_v26 }
 0x18e   :  { %236 = vrcp.f32 %v145_v27  ;;  %v157_v31 = vand.u32 2147483648, %v145_v27  ;;  %v155_v33 = vand.u32 2147483647, %v145_v27  ;;  %vm151_vm5 = vweird.f32 %v145_v27 }
 0x190   :  { %v158_v35 = vor.u32 1.1754944e-38, %v157_v31  ;;  %vm156_vm7 = vcmp.eq.f32.partialorder %v155_v33, 8.507059e+37 }
 0x194   :  { %v237_v28 = vpop.eup %236 }
 0x195   :  { %v147_v29 = vmul.f32 %v237_v28, %v145_v27  ;;  %vm152_vm4 = vweird.f32 %v237_v28 }
 0x196   :  { %vm153_vm6 = vmor %vm151_vm5, %vm152_vm4 }
 0x197   :  { %v148_v30 = vsub.f32 1.0, %v147_v29 }
 0x199   :  { %v149_v32 = vmul.f32 %v237_v28, %v148_v30 }
 0x19b   :  { %v150_v34 = vadd.f32 %v237_v28, %v149_v32 }
 0x19d   :  { %v154_v36 = vsel %vm153_vm6, %v237_v28, %v150_v34 }
 0x19e   :  { %v159_v37 = vsel %vm156_vm7, %v158_v35, %v154_v36 }
 0x19f   :  { %v161_v38 = vmul.f32 %v159_v37, %v140_v24 }
 0x1a1   :  { %222 = vmatmul.msk.f32.vlgmr.msra.gmra.mxu2 %vm174_vm8, %v161_v38 }
 0x224   :  { %v195_v40 = vpop.f32.mrf.mxu2 }
 0x225   :  { %v196_v41 = vadd.f32 %v233_v39, %v195_v40 }
 0x227   :  { %198 = vst.msk [vmem:[#allocation8] sm:$0xff] %vm174_vm8, %v196_v41 }
 0x228   :  { %209 = dma.vmem_to_hbm [thread:$0]  %s205_s16, 128, %s207_s19, [#allocation4]  }
 0x229   :  { %338 = dma.done.wait [#allocation4], 128  }
 0x22a   :  { %339 = vsyncadd [#allocation4], 4294967168 }
 0x22b   :  { %214 = vsyncpa [#allocation3], 1 }
 0x22c   :  { %215 = vsyncpa [#allocation6], 1 }
 0x22d   :  { %216 = vsyncpa [#allocation4], 1 }

</bundles_post_ra>
